<compile_context>
chip_gen: v7x
topology: tpu7x:2x2x1
jax: 0.10.0
libtpu: 0.0.40
codegen_flags: <defaults>
</compile_context>

<pallas_src>
import functools
import math

import jax
import jax.numpy as jnp
from jax.experimental import pallas as pl
from jax.experimental.pallas import tpu as pltpu


# ----------------------------- in-kernel helpers -----------------------------

def _layernorm(x, gamma, beta, eps):
    """LayerNorm over the last axis, f32 statistics (BERT post-LN, eps=1e-12)."""
    mu = jnp.mean(x, axis=-1, keepdims=True)
    xc = x - mu
    var = jnp.mean(xc * xc, axis=-1, keepdims=True)
    return xc * jax.lax.rsqrt(var + eps) * gamma + beta


def _gelu_tanh(x):
    # TODO(synk): PyTorch BertIntermediate uses erf-GELU; tanh approximation is
    # used here (erf is not reliably lowerable in Mosaic), differs at ~1e-3.
    c = math.sqrt(2.0 / math.pi)
    return 0.5 * x * (1.0 + jnp.tanh(c * (x + 0.044715 * x * x * x)))


# ------------------------------ fused encoder kernel -------------------------
# grid = (B, L): batch axis "parallel", layer axis "arbitrary" (sequential).
# The activation of batch b is carried across the layer axis directly in
# out_ref (its block index is constant over L, so it stays VMEM-resident).

def _behrt_encoder_kernel(
    x_in_ref,     # (S, H)   f32   input hidden state of batch b
    mask_ref,     # (1, S)   f32   attention mask row of batch b (1=keep, 0=pad)
    wqkv_ref,     # (H, 3H)  bf16  fused QKV weight of layer l
    wo_ref,       # (H, H)   bf16  attention output projection
    wi_ref,       # (H, I)   bf16  FFN in
    wf_ref,       # (I, H)   bf16  FFN out
    vec_ref,      # (8, W)   f32   packed biases / LayerNorm params of layer l
    out_ref,      # (S, H)   f32   output block; VMEM-resident carry over layers
    *, num_heads, head_dim, inter_size, eps):
    layer = pl.program_id(1)

    # Load the input activation into the carried output block at layer 0 only.
    @pl.when(layer == 0)
    def _():
        out_ref[...] = x_in_ref[...].astype(jnp.float32)

    x = out_ref[...]                                    # (S, H) f32
    S, H = x.shape
    nh, d, I = num_heads, head_dim, inter_size
    scale = 1.0 / math.sqrt(d)

    # ---- unpack the packed per-layer vector slab (one DMA) ------------------
    vec = vec_ref[...]                                  # (8, W) f32
    bqkv = vec[0:1, 0:3 * H]
    bo   = vec[1:2, 0:H]
    ln1g = vec[2:3, 0:H]
    ln1b = vec[3:4, 0:H]
    bi   = vec[4:5, 0:I]
    bf2  = vec[5:6, 0:H]
    ln2g = vec[6:7, 0:H]
    ln2b = vec[7:8, 0:H]

    # ---- additive attention mask built in-kernel:  (1 - m) * -10000 ---------
    add_mask = ((1.0 - mask_ref[...]) * -10000.0)[None, :, :]    # (1, 1, S)

    # ---- fused QKV projection: bf16 operands, f32 accumulation --------------
    qkv = jnp.dot(x.astype(jnp.bfloat16), wqkv_ref[...],
                  preferred_element_type=jnp.float32) + bqkv     # (S, 3H) f32

    # Head-major (nh, S, d) layout; batched einsums keep MXU pushes contiguous.
    q = (qkv[:, 0:H] * scale).astype(jnp.bfloat16)               # fold 1/sqrt(d)
    k = qkv[:, H:2 * H].astype(jnp.bfloat16)
    v = qkv[:, 2 * H:3 * H].astype(jnp.bfloat16)
    q3 = jnp.stack([q[:, h * d:(h + 1) * d] for h in range(nh)], axis=0)
    k3 = jnp.stack([k[:, h * d:(h + 1) * d] for h in range(nh)], axis=0)
    v3 = jnp.stack([v[:, h * d:(h + 1) * d] for h in range(nh)], axis=0)

    s = jnp.einsum('hqd,hkd->hqk', q3, k3,
                   preferred_element_type=jnp.float32) + add_mask   # (nh, S, S)
    m = jnp.max(s, axis=-1, keepdims=True)
    p = jnp.exp(s - m)
    denom = jnp.sum(p, axis=-1, keepdims=True)
    p = p * pl.reciprocal(denom, approx=True)        # EUP slot, ~1e-3 rel. err

    ctx3 = jnp.einsum('hqk,hkd->hqd', p.astype(jnp.bfloat16), v3,
                      preferred_element_type=jnp.float32)           # (nh, S, d)
    ctx = jnp.concatenate([ctx3[h] for h in range(nh)], axis=-1)    # (S, H)

    # ---- attention output projection + residual + LayerNorm -----------------
    attn = jnp.dot(ctx.astype(jnp.bfloat16), wo_ref[...],
                   preferred_element_type=jnp.float32) + bo
    x = _layernorm(attn + x, ln1g, ln1b, eps)

    # ---- feed-forward network + residual + LayerNorm ------------------------
    h1 = jnp.dot(x.astype(jnp.bfloat16), wi_ref[...],
                 preferred_element_type=jnp.float32) + bi
    h1 = _gelu_tanh(h1)
    ffn = jnp.dot(h1.astype(jnp.bfloat16), wf_ref[...],
                  preferred_element_type=jnp.float32) + bf2
    x = _layernorm(ffn + x, ln2g, ln2b, eps)

    # TODO(synk): attention / hidden dropout omitted (eval-mode equivalence).

    out_ref[...] = x                                    # carry to next layer


# ------------------------- parameter initialization --------------------------

def init_aggregator_params(key, hidden, intermediate, num_layers):
    """Stacked per-layer parameters, pre-fused/packed for the kernel."""
    H, I, L = hidden, intermediate, num_layers
    W = ((max(3 * H, I) + 127) // 128) * 128      # lane-padded packed-vec width

    def w(k, shape):
        return 0.02 * jax.random.normal(k, shape, dtype=jnp.float32)

    wqkv, wo, wi, wf = [], [], [], []
    for _ in range(L):
        key, kq, kk, kv, ko, ki, kf = jax.random.split(key, 7)
        wqkv.append(jnp.concatenate(
            [w(kq, (H, H)), w(kk, (H, H)), w(kv, (H, H))], axis=1))  # (H, 3H)
        wo.append(w(ko, (H, H)))
        wi.append(w(ki, (H, I)))
        wf.append(w(kf, (I, H)))

    # Packed per-layer small vectors (rows):
    #   0: qkv bias (3H)    1: out-proj bias (H)   2/3: LN1 gamma / beta
    #   4: FFN-in bias (I)  5: FFN-out bias (H)    6/7: LN2 gamma / beta
    vec = jnp.zeros((L, 8, W), jnp.float32)
    vec = vec.at[:, 2, :H].set(1.0)   # LN1 gamma
    vec = vec.at[:, 6, :H].set(1.0)   # LN2 gamma

    return dict(
        wqkv=jnp.stack(wqkv).astype(jnp.bfloat16),    # (L, H, 3H) bf16
        wo=jnp.stack(wo).astype(jnp.bfloat16),        # (L, H, H)  bf16
        wi=jnp.stack(wi).astype(jnp.bfloat16),        # (L, H, I)  bf16
        wf=jnp.stack(wf).astype(jnp.bfloat16),        # (L, I, H)  bf16
        vec=vec,                                      # (L, 8, W)  f32
    )


# --------------------------------- forward -----------------------------------

def _round_up(a, b):
    return -(-a // b) * b


def _block_bytes(shape, dtype):
    """Tile-padded VMEM bytes of one block ((sublane,128) padding)."""
    itemsize = jnp.dtype(dtype).itemsize
    sublane = {4: 8, 2: 16, 1: 32}.get(itemsize, 8)
    *lead, r, c = shape
    n = 1
    for v in lead:
        n *= v
    return n * _round_up(r, sublane) * _round_up(c, 128) * itemsize


def aggregator_forward(hidden_state, mask, params, num_heads, encounter=True):
    """Equivalent of Aggregator.forward(hidden_state, mask, encounter)."""
    # TODO(synk): `encounter` does not change the aggregator encoder's
    # self-attention math in BEHRT, so it is unused here.
    del encounter
    B, S, H = hidden_state.shape
    L = params["wqkv"].shape[0]
    I = params["wi"].shape[-1]
    W = params["vec"].shape[-1]
    d = H // num_heads
    assert num_heads * d == H
    out_dtype = hidden_state.dtype

    x = hidden_state.astype(jnp.float32)
    mask3 = mask.astype(jnp.float32).reshape(B, 1, S)   # mask preprocessing is in-kernel

    kernel = functools.partial(
        _behrt_encoder_kernel,
        num_heads=num_heads, head_dim=d, inter_size=I, eps=1e-12)

    per_batch = lambda b, l: (b, 0, 0)   # block follows the batch index
    per_layer = lambda b, l: (l, 0, 0)   # block follows the layer index

    # VMEM budget: all blocks double-buffered + generous temp headroom.
    blocks = [((S, H), jnp.float32), ((1, S), jnp.float32),
              ((H, 3 * H), jnp.bfloat16), ((H, H), jnp.bfloat16),
              ((H, I), jnp.bfloat16), ((I, H), jnp.bfloat16),
              ((8, W), jnp.float32), ((S, H), jnp.float32)]
    need = 2 * sum(_block_bytes(s, t) for s, t in blocks)
    vmem_limit = int(min(max(2 * need + (8 << 20), 32 << 20), 100 << 20))

    out = pl.pallas_call(
        kernel,
        out_shape=jax.ShapeDtypeStruct((B, S, H), jnp.float32),
        grid=(B, L),
        in_specs=[
            pl.BlockSpec((None, S, H), per_batch),        # x (per batch)
            pl.BlockSpec((None, 1, S), per_batch),        # mask row (per batch)
            pl.BlockSpec((None, H, 3 * H), per_layer),    # wqkv
            pl.BlockSpec((None, H, H), per_layer),        # wo
            pl.BlockSpec((None, H, I), per_layer),        # wi
            pl.BlockSpec((None, I, H), per_layer),        # wf
            pl.BlockSpec((None, 8, W), per_layer),        # packed biases / LN
        ],
        out_specs=pl.BlockSpec((None, S, H), per_batch),
        compiler_params=pltpu.CompilerParams(
            dimension_semantics=("parallel", "arbitrary"),
            vmem_limit_bytes=vmem_limit),
    )(x, mask3,
      params["wqkv"], params["wo"], params["wi"], params["wf"], params["vec"])

    return out.astype(out_dtype)


# ----------------------------------- main -------------------------------------

if __name__ == "__main__":
    B, S, H = 2, 8, 32
    NUM_HEADS = 4
    INTERMEDIATE = 64
    NUM_LAYERS = 2   # params['aggregator_num_layer']

    key = jax.random.PRNGKey(0)
    k_h, k_p = jax.random.split(key)

    hidden_state = jax.random.normal(k_h, (B, S, H), dtype=jnp.float32)
    mask = jnp.ones((B, S), dtype=jnp.float32)
    mask = mask.at[1, 6:].set(0.0)   # pad last two positions of batch 1

    params = init_aggregator_params(k_p, H, INTERMEDIATE, NUM_LAYERS)

    out = aggregator_forward(hidden_state, mask, params, NUM_HEADS, encounter=True)
    out = jax.block_until_ready(out)

    assert out.shape == (B, S, H), out.shape
    assert out.dtype == jnp.float32, out.dtype
    assert bool(jnp.all(jnp.isfinite(out)))
    print("KERNEL_OK")
</pallas_src>

<mosaic_0001>
module attributes {stable_mosaic.version = 11 : i64} {
  func.func @_behrt_encoder_kernel(%arg0: i32, %arg1: i32, %arg2: memref<1x8x32xf32, #tpu.memory_space<vmem>>, %arg3: memref<1x1x8xf32, #tpu.memory_space<vmem>>, %arg4: memref<1x32x96xbf16, #tpu.memory_space<vmem>>, %arg5: memref<1x32x32xbf16, #tpu.memory_space<vmem>>, %arg6: memref<1x32x64xbf16, #tpu.memory_space<vmem>>, %arg7: memref<1x64x32xbf16, #tpu.memory_space<vmem>>, %arg8: memref<1x8x128xf32, #tpu.memory_space<vmem>>, %arg9: memref<1x8x32xf32, #tpu.memory_space<vmem>>) attributes {dimension_semantics = [#tpu.dimension_semantics<parallel>, #tpu.dimension_semantics<arbitrary>], iteration_bounds = array<i64: 2, 2>, scalar_prefetch = 0 : i64, scratch_operands = 0 : i64, tpu.core_type = #tpu.core_type<tc>, window_params = [{transform_indices = @transform_0, window_bounds = array<i64: 1, 8, 32>}, {transform_indices = @transform_1, window_bounds = array<i64: 1, 1, 8>}, {transform_indices = @transform_2, window_bounds = array<i64: 1, 32, 96>}, {transform_indices = @transform_3, window_bounds = array<i64: 1, 32, 32>}, {transform_indices = @transform_4, window_bounds = array<i64: 1, 32, 64>}, {transform_indices = @transform_5, window_bounds = array<i64: 1, 64, 32>}, {transform_indices = @transform_6, window_bounds = array<i64: 1, 8, 128>}, {transform_indices = @transform_7, window_bounds = array<i64: 1, 8, 32>}]} {
    %c0_i32 = arith.constant 0 : i32
    %0 = arith.cmpi eq, %arg1, %c0_i32 : i32
    %1 = arith.extui %0 : i1 to i32
    %c0_i32_0 = arith.constant 0 : i32
    %2 = arith.cmpi ne, %1, %c0_i32_0 : i32
    scf.if %2 {
      %c0_48 = arith.constant 0 : index
      %c0_49 = arith.constant 0 : index
      %c0_50 = arith.constant 0 : index
      %163 = vector.load %arg2[%c0_48, %c0_49, %c0_50] : memref<1x8x32xf32, #tpu.memory_space<vmem>>, vector<1x8x32xf32>
      %164 = vector.shape_cast %163 : vector<1x8x32xf32> to vector<8x32xf32>
      %c0_51 = arith.constant 0 : index
      %c0_52 = arith.constant 0 : index
      %c0_53 = arith.constant 0 : index
      %165 = vector.load %arg9[%c0_51, %c0_52, %c0_53] : memref<1x8x32xf32, #tpu.memory_space<vmem>>, vector<1x8x32xf32>
      %166 = vector.shape_cast %165 : vector<1x8x32xf32> to vector<8x32xf32>
      %167 = vector.shape_cast %164 : vector<8x32xf32> to vector<1x8x32xf32>
      tpu.vector_store %arg9[%c0_51, %c0_52, %c0_53], %167 {strides = array<i32>} : memref<1x8x32xf32, #tpu.memory_space<vmem>>, vector<1x8x32xf32>,
    } else {
    }
    %c0 = arith.constant 0 : index
    %c0_1 = arith.constant 0 : index
    %c0_2 = arith.constant 0 : index
    %3 = vector.load %arg9[%c0, %c0_1, %c0_2] : memref<1x8x32xf32, #tpu.memory_space<vmem>>, vector<1x8x32xf32>
    %4 = vector.shape_cast %3 : vector<1x8x32xf32> to vector<8x32xf32>
    %c0_3 = arith.constant 0 : index
    %c0_4 = arith.constant 0 : index
    %c0_5 = arith.constant 0 : index
    %5 = vector.load %arg8[%c0_3, %c0_4, %c0_5] : memref<1x8x128xf32, #tpu.memory_space<vmem>>, vector<1x8x128xf32>
    %6 = vector.shape_cast %5 : vector<1x8x128xf32> to vector<8x128xf32>
    %7 = vector.extract_strided_slice %6 {offsets = [0, 0], sizes = [1, 96], strides = [1, 1]} : vector<8x128xf32> to vector<1x96xf32>
    %8 = vector.extract_strided_slice %6 {offsets = [1, 0], sizes = [1, 32], strides = [1, 1]} : vector<8x128xf32> to vector<1x32xf32>
    %9 = vector.extract_strided_slice %6 {offsets = [2, 0], sizes = [1, 32], strides = [1, 1]} : vector<8x128xf32> to vector<1x32xf32>
    %10 = vector.extract_strided_slice %6 {offsets = [3, 0], sizes = [1, 32], strides = [1, 1]} : vector<8x128xf32> to vector<1x32xf32>
    %11 = vector.extract_strided_slice %6 {offsets = [4, 0], sizes = [1, 64], strides = [1, 1]} : vector<8x128xf32> to vector<1x64xf32>
    %12 = vector.extract_strided_slice %6 {offsets = [5, 0], sizes = [1, 32], strides = [1, 1]} : vector<8x128xf32> to vector<1x32xf32>
    %13 = vector.extract_strided_slice %6 {offsets = [6, 0], sizes = [1, 32], strides = [1, 1]} : vector<8x128xf32> to vector<1x32xf32>
    %14 = vector.extract_strided_slice %6 {offsets = [7, 0], sizes = [1, 32], strides = [1, 1]} : vector<8x128xf32> to vector<1x32xf32>
    %c0_6 = arith.constant 0 : index
    %c0_7 = arith.constant 0 : index
    %c0_8 = arith.constant 0 : index
    %15 = vector.load %arg3[%c0_6, %c0_7, %c0_8] : memref<1x1x8xf32, #tpu.memory_space<vmem>>, vector<1x1x8xf32>
    %16 = vector.shape_cast %15 : vector<1x1x8xf32> to vector<1x8xf32>
    %cst = arith.constant 1.000000e+00 : f32
    %17 = vector.broadcast %cst : f32 to vector<1x8xf32>
    %18 = arith.subf %17, %16 : vector<1x8xf32>
    %cst_9 = arith.constant -1.000000e+04 : f32
    %19 = vector.broadcast %cst_9 : f32 to vector<1x8xf32>
    %20 = arith.mulf %18, %19 : vector<1x8xf32>
    %21 = vector.shape_cast %20 : vector<1x8xf32> to vector<1x1x8xf32>
    %22 = arith.truncf %4 : vector<8x32xf32> to vector<8x32xbf16>
    %c0_10 = arith.constant 0 : index
    %c0_11 = arith.constant 0 : index
    %c0_12 = arith.constant 0 : index
    %23 = vector.load %arg4[%c0_10, %c0_11, %c0_12] : memref<1x32x96xbf16, #tpu.memory_space<vmem>>, vector<1x32x96xbf16>
    %24 = vector.shape_cast %23 : vector<1x32x96xbf16> to vector<32x96xbf16>
    %cst_13 = arith.constant dense<0.000000e+00> : vector<8x96xf32>
    %25 = tpu.matmul %22, %24, %cst_13 {dimension_numbers = #tpu.dot_dimension_numbers<[1], [0], [0], [1], [0, 0, 1, 1], [], []>} : vector<8x32xbf16>, vector<32x96xbf16>, vector<8x96xf32> -> vector<8x96xf32>
    %26 = vector.broadcast %7 : vector<1x96xf32> to vector<8x96xf32>
    %27 = arith.addf %25, %26 : vector<8x96xf32>
    %28 = vector.extract_strided_slice %27 {offsets = [0, 0], sizes = [8, 32], strides = [1, 1]} : vector<8x96xf32> to vector<8x32xf32>
    %cst_14 = arith.constant 0.353553385 : f32
    %29 = vector.broadcast %cst_14 : f32 to vector<8x32xf32>
    %30 = arith.mulf %28, %29 : vector<8x32xf32>
    %31 = arith.truncf %30 : vector<8x32xf32> to vector<8x32xbf16>
    %32 = vector.extract_strided_slice %27 {offsets = [0, 32], sizes = [8, 32], strides = [1, 1]} : vector<8x96xf32> to vector<8x32xf32>
    %33 = arith.truncf %32 : vector<8x32xf32> to vector<8x32xbf16>
    %34 = vector.extract_strided_slice %27 {offsets = [0, 64], sizes = [8, 32], strides = [1, 1]} : vector<8x96xf32> to vector<8x32xf32>
    %35 = arith.truncf %34 : vector<8x32xf32> to vector<8x32xbf16>
    %36 = vector.extract_strided_slice %31 {offsets = [0, 0], sizes = [8, 8], strides = [1, 1]} : vector<8x32xbf16> to vector<8x8xbf16>
    %37 = vector.extract_strided_slice %31 {offsets = [0, 8], sizes = [8, 8], strides = [1, 1]} : vector<8x32xbf16> to vector<8x8xbf16>
    %38 = vector.extract_strided_slice %31 {offsets = [0, 16], sizes = [8, 8], strides = [1, 1]} : vector<8x32xbf16> to vector<8x8xbf16>
    %39 = vector.extract_strided_slice %31 {offsets = [0, 24], sizes = [8, 8], strides = [1, 1]} : vector<8x32xbf16> to vector<8x8xbf16>
    %40 = vector.shape_cast %36 : vector<8x8xbf16> to vector<1x8x8xbf16>
    %41 = vector.shape_cast %37 : vector<8x8xbf16> to vector<1x8x8xbf16>
    %42 = vector.shape_cast %38 : vector<8x8xbf16> to vector<1x8x8xbf16>
    %43 = vector.shape_cast %39 : vector<8x8xbf16> to vector<1x8x8xbf16>
    %44 = tpu.concatenate %40, %41, %42, %43 in 0 : vector<1x8x8xbf16>, vector<1x8x8xbf16>, vector<1x8x8xbf16>, vector<1x8x8xbf16> -> vector<4x8x8xbf16>
    %45 = vector.extract_strided_slice %33 {offsets = [0, 0], sizes = [8, 8], strides = [1, 1]} : vector<8x32xbf16> to vector<8x8xbf16>
    %46 = vector.extract_strided_slice %33 {offsets = [0, 8], sizes = [8, 8], strides = [1, 1]} : vector<8x32xbf16> to vector<8x8xbf16>
    %47 = vector.extract_strided_slice %33 {offsets = [0, 16], sizes = [8, 8], strides = [1, 1]} : vector<8x32xbf16> to vector<8x8xbf16>
    %48 = vector.extract_strided_slice %33 {offsets = [0, 24], sizes = [8, 8], strides = [1, 1]} : vector<8x32xbf16> to vector<8x8xbf16>
    %49 = vector.shape_cast %45 : vector<8x8xbf16> to vector<1x8x8xbf16>
    %50 = vector.shape_cast %46 : vector<8x8xbf16> to vector<1x8x8xbf16>
    %51 = vector.shape_cast %47 : vector<8x8xbf16> to vector<1x8x8xbf16>
    %52 = vector.shape_cast %48 : vector<8x8xbf16> to vector<1x8x8xbf16>
    %53 = tpu.concatenate %49, %50, %51, %52 in 0 : vector<1x8x8xbf16>, vector<1x8x8xbf16>, vector<1x8x8xbf16>, vector<1x8x8xbf16> -> vector<4x8x8xbf16>
    %54 = vector.extract_strided_slice %35 {offsets = [0, 0], sizes = [8, 8], strides = [1, 1]} : vector<8x32xbf16> to vector<8x8xbf16>
    %55 = vector.extract_strided_slice %35 {offsets = [0, 8], sizes = [8, 8], strides = [1, 1]} : vector<8x32xbf16> to vector<8x8xbf16>
    %56 = vector.extract_strided_slice %35 {offsets = [0, 16], sizes = [8, 8], strides = [1, 1]} : vector<8x32xbf16> to vector<8x8xbf16>
    %57 = vector.extract_strided_slice %35 {offsets = [0, 24], sizes = [8, 8], strides = [1, 1]} : vector<8x32xbf16> to vector<8x8xbf16>
    %58 = vector.shape_cast %54 : vector<8x8xbf16> to vector<1x8x8xbf16>
    %59 = vector.shape_cast %55 : vector<8x8xbf16> to vector<1x8x8xbf16>
    %60 = vector.shape_cast %56 : vector<8x8xbf16> to vector<1x8x8xbf16>
    %61 = vector.shape_cast %57 : vector<8x8xbf16> to vector<1x8x8xbf16>
    %62 = tpu.concatenate %58, %59, %60, %61 in 0 : vector<1x8x8xbf16>, vector<1x8x8xbf16>, vector<1x8x8xbf16>, vector<1x8x8xbf16> -> vector<4x8x8xbf16>
    "tpu.trace_start"() <{level = 10 : i32, message = "hqd,hkd->hqk"}> : () -> ()
    %cst_15 = arith.constant dense<0.000000e+00> : vector<4x8x8xf32>
    %63 = tpu.matmul %44, %53, %cst_15 {dimension_numbers = #tpu.dot_dimension_numbers<[2], [2], [1], [1], [0, 0, 0, 1, 1, 1], [0], [0]>} : vector<4x8x8xbf16>, vector<4x8x8xbf16>, vector<4x8x8xf32> -> vector<4x8x8xf32>
    "tpu.trace_stop"() : () -> ()
    %64 = vector.broadcast %21 : vector<1x1x8xf32> to vector<4x8x8xf32>
    %65 = arith.addf %63, %64 : vector<4x8x8xf32>
    %cst_16 = arith.constant dense<0xFF800000> : vector<4x8xf32>
    %66 = vector.multi_reduction <maximumf>, %65, %cst_16 [2] : vector<4x8x8xf32> to vector<4x8xf32>
    %67 = vector.shape_cast %66 : vector<4x8xf32> to vector<4x8x1xf32>
    %68 = vector.broadcast %67 : vector<4x8x1xf32> to vector<4x8x8xf32>
    %69 = arith.subf %65, %68 : vector<4x8x8xf32>
    %70 = math.exp %69 : vector<4x8x8xf32>
    %cst_17 = arith.constant dense<0.000000e+00> : vector<4x8xf32>
    %71 = vector.multi_reduction <add>, %70, %cst_17 [2] : vector<4x8x8xf32> to vector<4x8xf32>
    %72 = vector.shape_cast %71 : vector<4x8xf32> to vector<4x8x1xf32>
    %73 = tpu.reciprocal %72 {approx = true} : vector<4x8x1xf32> -> vector<4x8x1xf32>
    %74 = vector.broadcast %73 : vector<4x8x1xf32> to vector<4x8x8xf32>
    %75 = arith.mulf %70, %74 : vector<4x8x8xf32>
    %76 = arith.truncf %75 : vector<4x8x8xf32> to vector<4x8x8xbf16>
    "tpu.trace_start"() <{level = 10 : i32, message = "hqk,hkd->hqd"}> : () -> ()
    %cst_18 = arith.constant dense<0.000000e+00> : vector<4x8x8xf32>
    %77 = tpu.matmul %76, %62, %cst_18 {dimension_numbers = #tpu.dot_dimension_numbers<[2], [1], [1], [2], [0, 0, 0, 1, 1, 2], [0], [0]>} : vector<4x8x8xbf16>, vector<4x8x8xbf16>, vector<4x8x8xf32> -> vector<4x8x8xf32>
    "tpu.trace_stop"() : () -> ()
    %78 = vector.extract_strided_slice %77 {offsets = [0, 0, 0], sizes = [1, 8, 8], strides = [1, 1, 1]} : vector<4x8x8xf32> to vector<1x8x8xf32>
    %79 = vector.shape_cast %78 : vector<1x8x8xf32> to vector<8x8xf32>
    %80 = vector.extract_strided_slice %77 {offsets = [1, 0, 0], sizes = [1, 8, 8], strides = [1, 1, 1]} : vector<4x8x8xf32> to vector<1x8x8xf32>
    %81 = vector.shape_cast %80 : vector<1x8x8xf32> to vector<8x8xf32>
    %82 = vector.extract_strided_slice %77 {offsets = [2, 0, 0], sizes = [1, 8, 8], strides = [1, 1, 1]} : vector<4x8x8xf32> to vector<1x8x8xf32>
    %83 = vector.shape_cast %82 : vector<1x8x8xf32> to vector<8x8xf32>
    %84 = vector.extract_strided_slice %77 {offsets = [3, 0, 0], sizes = [1, 8, 8], strides = [1, 1, 1]} : vector<4x8x8xf32> to vector<1x8x8xf32>
    %85 = vector.shape_cast %84 : vector<1x8x8xf32> to vector<8x8xf32>
    %86 = tpu.concatenate %79, %81, %83, %85 in 1 : vector<8x8xf32>, vector<8x8xf32>, vector<8x8xf32>, vector<8x8xf32> -> vector<8x32xf32>
    %87 = arith.truncf %86 : vector<8x32xf32> to vector<8x32xbf16>
    %c0_19 = arith.constant 0 : index
    %c0_20 = arith.constant 0 : index
    %c0_21 = arith.constant 0 : index
    %88 = vector.load %arg5[%c0_19, %c0_20, %c0_21] : memref<1x32x32xbf16, #tpu.memory_space<vmem>>, vector<1x32x32xbf16>
    %89 = vector.shape_cast %88 : vector<1x32x32xbf16> to vector<32x32xbf16>
    %cst_22 = arith.constant dense<0.000000e+00> : vector<8x32xf32>
    %90 = tpu.matmul %87, %89, %cst_22 {dimension_numbers = #tpu.dot_dimension_numbers<[1], [0], [0], [1], [0, 0, 1, 1], [], []>} : vector<8x32xbf16>, vector<32x32xbf16>, vector<8x32xf32> -> vector<8x32xf32>
    %91 = vector.broadcast %8 : vector<1x32xf32> to vector<8x32xf32>
    %92 = arith.addf %90, %91 : vector<8x32xf32>
    %93 = arith.addf %92, %4 : vector<8x32xf32>
    %cst_23 = arith.constant dense<0.000000e+00> : vector<8xf32>
    %94 = vector.multi_reduction <add>, %93, %cst_23 [1] : vector<8x32xf32> to vector<8xf32>
    %95 = vector.shape_cast %94 : vector<8xf32> to vector<8x1xf32>
    %cst_24 = arith.constant 3.200000e+01 : f32
    %96 = vector.broadcast %cst_24 : f32 to vector<8x1xf32>
    %97 = arith.divf %95, %96 : vector<8x1xf32>
    %98 = vector.broadcast %97 : vector<8x1xf32> to vector<8x32xf32>
    %99 = arith.subf %93, %98 : vector<8x32xf32>
    %100 = arith.mulf %99, %99 : vector<8x32xf32>
    %cst_25 = arith.constant dense<0.000000e+00> : vector<8xf32>
    %101 = vector.multi_reduction <add>, %100, %cst_25 [1] : vector<8x32xf32> to vector<8xf32>
    %102 = vector.shape_cast %101 : vector<8xf32> to vector<8x1xf32>
    %cst_26 = arith.constant 3.200000e+01 : f32
    %103 = vector.broadcast %cst_26 : f32 to vector<8x1xf32>
    %104 = arith.divf %102, %103 : vector<8x1xf32>
    %cst_27 = arith.constant 9.99999996E-13 : f32
    %105 = vector.broadcast %cst_27 : f32 to vector<8x1xf32>
    %106 = arith.addf %104, %105 : vector<8x1xf32>
    %107 = math.rsqrt %106 : vector<8x1xf32>
    %108 = vector.broadcast %107 : vector<8x1xf32> to vector<8x32xf32>
    %109 = arith.mulf %99, %108 : vector<8x32xf32>
    %110 = vector.broadcast %9 : vector<1x32xf32> to vector<8x32xf32>
    %111 = arith.mulf %109, %110 : vector<8x32xf32>
    %112 = vector.broadcast %10 : vector<1x32xf32> to vector<8x32xf32>
    %113 = arith.addf %111, %112 : vector<8x32xf32>
    %114 = arith.truncf %113 : vector<8x32xf32> to vector<8x32xbf16>
    %c0_28 = arith.constant 0 : index
    %c0_29 = arith.constant 0 : index
    %c0_30 = arith.constant 0 : index
    %115 = vector.load %arg6[%c0_28, %c0_29, %c0_30] : memref<1x32x64xbf16, #tpu.memory_space<vmem>>, vector<1x32x64xbf16>
    %116 = vector.shape_cast %115 : vector<1x32x64xbf16> to vector<32x64xbf16>
    %cst_31 = arith.constant dense<0.000000e+00> : vector<8x64xf32>
    %117 = tpu.matmul %114, %116, %cst_31 {dimension_numbers = #tpu.dot_dimension_numbers<[1], [0], [0], [1], [0, 0, 1, 1], [], []>} : vector<8x32xbf16>, vector<32x64xbf16>, vector<8x64xf32> -> vector<8x64xf32>
    %118 = vector.broadcast %11 : vector<1x64xf32> to vector<8x64xf32>
    %119 = arith.addf %117, %118 : vector<8x64xf32>
    %cst_32 = arith.constant 5.000000e-01 : f32
    %120 = vector.broadcast %cst_32 : f32 to vector<8x64xf32>
    %121 = arith.mulf %120, %119 : vector<8x64xf32>
    %cst_33 = arith.constant 4.471500e-02 : f32
    %122 = vector.broadcast %cst_33 : f32 to vector<8x64xf32>
    %123 = arith.mulf %122, %119 : vector<8x64xf32>
    %124 = arith.mulf %123, %119 : vector<8x64xf32>
    %125 = arith.mulf %124, %119 : vector<8x64xf32>
    %126 = arith.addf %119, %125 : vector<8x64xf32>
    %cst_34 = arith.constant 0.797884583 : f32
    %127 = vector.broadcast %cst_34 : f32 to vector<8x64xf32>
    %128 = arith.mulf %127, %126 : vector<8x64xf32>
    %129 = math.tanh %128 : vector<8x64xf32>
    %cst_35 = arith.constant 1.000000e+00 : f32
    %130 = vector.broadcast %cst_35 : f32 to vector<8x64xf32>
    %131 = arith.addf %130, %129 : vector<8x64xf32>
    %132 = arith.mulf %121, %131 : vector<8x64xf32>
    %133 = arith.truncf %132 : vector<8x64xf32> to vector<8x64xbf16>
    %c0_36 = arith.constant 0 : index
    %c0_37 = arith.constant 0 : index
    %c0_38 = arith.constant 0 : index
    %134 = vector.load %arg7[%c0_36, %c0_37, %c0_38] : memref<1x64x32xbf16, #tpu.memory_space<vmem>>, vector<1x64x32xbf16>
    %135 = vector.shape_cast %134 : vector<1x64x32xbf16> to vector<64x32xbf16>
    %cst_39 = arith.constant dense<0.000000e+00> : vector<8x32xf32>
    %136 = tpu.matmul %133, %135, %cst_39 {dimension_numbers = #tpu.dot_dimension_numbers<[1], [0], [0], [1], [0, 0, 1, 1], [], []>} : vector<8x64xbf16>, vector<64x32xbf16>, vector<8x32xf32> -> vector<8x32xf32>
    %137 = vector.broadcast %12 : vector<1x32xf32> to vector<8x32xf32>
    %138 = arith.addf %136, %137 : vector<8x32xf32>
    %139 = arith.addf %138, %113 : vector<8x32xf32>
    %cst_40 = arith.constant dense<0.000000e+00> : vector<8xf32>
    %140 = vector.multi_reduction <add>, %139, %cst_40 [1] : vector<8x32xf32> to vector<8xf32>
    %141 = vector.shape_cast %140 : vector<8xf32> to vector<8x1xf32>
    %cst_41 = arith.constant 3.200000e+01 : f32
    %142 = vector.broadcast %cst_41 : f32 to vector<8x1xf32>
    %143 = arith.divf %141, %142 : vector<8x1xf32>
    %144 = vector.broadcast %143 : vector<8x1xf32> to vector<8x32xf32>
    %145 = arith.subf %139, %144 : vector<8x32xf32>
    %146 = arith.mulf %145, %145 : vector<8x32xf32>
    %cst_42 = arith.constant dense<0.000000e+00> : vector<8xf32>
    %147 = vector.multi_reduction <add>, %146, %cst_42 [1] : vector<8x32xf32> to vector<8xf32>
    %148 = vector.shape_cast %147 : vector<8xf32> to vector<8x1xf32>
    %cst_43 = arith.constant 3.200000e+01 : f32
    %149 = vector.broadcast %cst_43 : f32 to vector<8x1xf32>
    %150 = arith.divf %148, %149 : vector<8x1xf32>
    %cst_44 = arith.constant 9.99999996E-13 : f32
    %151 = vector.broadcast %cst_44 : f32 to vector<8x1xf32>
    %152 = arith.addf %150, %151 : vector<8x1xf32>
    %153 = math.rsqrt %152 : vector<8x1xf32>
    %154 = vector.broadcast %153 : vector<8x1xf32> to vector<8x32xf32>
    %155 = arith.mulf %145, %154 : vector<8x32xf32>
    %156 = vector.broadcast %13 : vector<1x32xf32> to vector<8x32xf32>
    %157 = arith.mulf %155, %156 : vector<8x32xf32>
    %158 = vector.broadcast %14 : vector<1x32xf32> to vector<8x32xf32>
    %159 = arith.addf %157, %158 : vector<8x32xf32>
    %c0_45 = arith.constant 0 : index
    %c0_46 = arith.constant 0 : index
    %c0_47 = arith.constant 0 : index
    %160 = vector.load %arg9[%c0_45, %c0_46, %c0_47] : memref<1x8x32xf32, #tpu.memory_space<vmem>>, vector<1x8x32xf32>
    %161 = vector.shape_cast %160 : vector<1x8x32xf32> to vector<8x32xf32>
    %162 = vector.shape_cast %159 : vector<8x32xf32> to vector<1x8x32xf32>
    tpu.vector_store %arg9[%c0_45, %c0_46, %c0_47], %162 {strides = array<i32>} : memref<1x8x32xf32, #tpu.memory_space<vmem>>, vector<1x8x32xf32>,
    return
  }
  func.func @transform_0(%arg0: i32, %arg1: i32) -> (i32, i32, i32) {
    %c0_i32 = arith.constant 0 : i32
    %c0_i32_0 = arith.constant 0 : i32
    %c0_i32_1 = arith.constant 0 : i32
    return %arg0, %c0_i32, %c0_i32_0 : i32, i32, i32
  }
  func.func @transform_1(%arg0: i32, %arg1: i32) -> (i32, i32, i32) {
    %c0_i32 = arith.constant 0 : i32
    %c0_i32_0 = arith.constant 0 : i32
    %c0_i32_1 = arith.constant 0 : i32
    return %arg0, %c0_i32, %c0_i32_0 : i32, i32, i32
  }
  func.func @transform_2(%arg0: i32, %arg1: i32) -> (i32, i32, i32) {
    %c0_i32 = arith.constant 0 : i32
    %c0_i32_0 = arith.constant 0 : i32
    %c0_i32_1 = arith.constant 0 : i32
    return %arg1, %c0_i32, %c0_i32_0 : i32, i32, i32
  }
  func.func @transform_3(%arg0: i32, %arg1: i32) -> (i32, i32, i32) {
    %c0_i32 = arith.constant 0 : i32
    %c0_i32_0 = arith.constant 0 : i32
    %c0_i32_1 = arith.constant 0 : i32
    return %arg1, %c0_i32, %c0_i32_0 : i32, i32, i32
  }
  func.func @transform_4(%arg0: i32, %arg1: i32) -> (i32, i32, i32) {
    %c0_i32 = arith.constant 0 : i32
    %c0_i32_0 = arith.constant 0 : i32
    %c0_i32_1 = arith.constant 0 : i32
    return %arg1, %c0_i32, %c0_i32_0 : i32, i32, i32
  }
  func.func @transform_5(%arg0: i32, %arg1: i32) -> (i32, i32, i32) {
    %c0_i32 = arith.constant 0 : i32
    %c0_i32_0 = arith.constant 0 : i32
    %c0_i32_1 = arith.constant 0 : i32
    return %arg1, %c0_i32, %c0_i32_0 : i32, i32, i32
  }
  func.func @transform_6(%arg0: i32, %arg1: i32) -> (i32, i32, i32) {
    %c0_i32 = arith.constant 0 : i32
    %c0_i32_0 = arith.constant 0 : i32
    %c0_i32_1 = arith.constant 0 : i32
    return %arg1, %c0_i32, %c0_i32_0 : i32, i32, i32
  }
  func.func @transform_7(%arg0: i32, %arg1: i32) -> (i32, i32, i32) {
    %c0_i32 = arith.constant 0 : i32
    %c0_i32_0 = arith.constant 0 : i32
    %c0_i32_1 = arith.constant 0 : i32
    return %arg0, %c0_i32, %c0_i32_0 : i32, i32, i32
  }
}

</mosaic_0001>

<bundles_post_ra>
// kernel: tpu_custom_call.1
= control target key start
LH: loop header
LB: loop body
LE: loop exit
PB: predicated region body
PF: predicated region fallthrough
CT: control target
= control target key end

     0   :  { %s2230_s0 = inlined_call_operand.hbm [shape: f32[2,8,32], index: 0, kind: input, shape index: {}]   ;;  %s2231_s1 = inlined_call_operand.vmem [shape: f32[2,1,8], index: 1, kind: input, shape index: {}]   ;;  %s2232_s2 = inlined_call_operand.vmem [shape: bf16[2,32,96], index: 2, kind: input, shape index: {}]   ;;  %s2233_s3 = inlined_call_operand.vmem [shape: bf16[2,32,32], index: 3, kind: input, shape index: {}]   ;;  %s2234_s4 = inlined_call_operand.vmem [shape: bf16[2,32,64], index: 4, kind: input, shape index: {}]   ;;  %s2235_s5 = inlined_call_operand.vmem [shape: bf16[2,64,32], index: 5, kind: input, shape index: {}]   ;;  %s2236_s6 = inlined_call_operand.vmem [shape: f32[2,8,128], index: 6, kind: input, shape index: {}]   ;;  %s2237_s7 = inlined_call_operand.hbm [shape: f32[2,8,32], index: 7, kind: output, shape index: {}]  }
   0x1   :  { %2249 = sst [smem:[#allocation18_spill]] %s2230_s0 }
   0x2   :  { %2250 = sst [smem:[#allocation19_spill]] %s2237_s7 }
   0x3   :  { %12 = vsyncpa [#allocation3], 0 }
   0x4   :  { %14 = vsyncpa [#allocation3 + $0x1], 0 }
   0x5   :  { %15 = vsyncpa [#allocation4], 0 }
   0x6   :  { %17 = vsyncpa [#allocation4 + $0x1], 0  ;;  %s1866_s24 = smov 0   ;;  %s1868_s25 = smov 0  }
   0x7   :  { %s1870_s26 = smov 0   ;;  %s1872_s27 = smov 0  }
   0x8   :  { %s1874_s28 = smov 0   ;;  %s1876_s29 = smov 0  }
   0x9   :  { %s1878_s30 = smov 0   ;;  %s1880_s8 = smov 0  }
   0xa LB: > { %2251 = sst [smem:[#allocation8_spill]] %s1784_s24  ;;  %s1401_s9 = sadd.s32 4294967295, %s1812_s8   ;;  %s1812_s8 = sphi %s1880_s8, %s23_s8   ;;  %s1808_s30 = sphi %s1878_s30, %s2282_s30   ;;  %s1804_s29 = sphi %s1876_s29, %s2281_s29   ;;  %s1800_s28 = sphi %s1874_s28, %s2280_s28   ;;  %s1796_s27 = sphi %s1872_s27, %s2279_s27   ;;  %s1792_s26 = sphi %s1870_s26, %s2278_s26   ;;  %s1788_s25 = sphi %s1868_s25, %s2277_s25   ;;  %s1784_s24 = sphi %s1866_s24, %s2276_s24  }
   0xb   : > { %2252 = sst [smem:[#allocation9_spill]] %s1788_s25  ;;  %s1402_s10 = sadd.s32 4294967294, %s1812_s8  }
   0xc   : > { %2253 = sst [smem:[#allocation10_spill]] %s1792_s26  ;;  %s32_s11 = sadd.s32 1, %s1804_s29 }
   0xd   : > { %2254 = sst [smem:[#allocation11_spill]] %s1804_s29  ;;  %s35_s12 = sadd.s32 1, %s1808_s30 }
   0xe   : > { %2255 = sst [smem:[#allocation12_spill]] %s1808_s30  ;;  %p33_p0 = scmp.ge.s32.totalorder %s32_s11, 2 }
   0xf   : > { %2256 = sst [smem:[#allocation13_spill]] %s1812_s8  ;;  %s42_s13 = sadd.s32 1, %s1792_s26 }
  0x10   : > { %p49_p1 = scmp.ne.s32.totalorder %s1792_s26, %s1788_s25  ;;  %p50_p2 = scmp.eq.s32.totalorder %s1812_s8, 0 }
  0x11   : > { %s2284_s11 = smov (%p33_p0, %s32_s11), 0  ;;  %s2286_s12 = smov (!%p33_p0, %s35_s12), %s1808_s30 }
  0x12   : > { %2257 = sst [smem:[#allocation14_spill]] %s2284_s11  ;;  %p1917_p3 = por %p50_p2, %p49_p1 }
  0x13   : > { %p55_p4 = scmp.ne.s32.totalorder %s1788_s25, %s1784_s24  ;;  %p37_p5 = scmp.ge.s32.totalorder %s2286_s12, 2 }
  0x14   : > { %p56_p6 = scmp.eq.s32.totalorder %s1401_s9, 0  ;;  %p235_p7 = scmp.eq.s32.totalorder %s1401_s9, 3 }
  0x15   : > { %p241_p8 = scmp.eq.s32.totalorder %s1402_s10, 3  ;;  %s2288_s12 = smov (%p37_p5, %s2286_s12), 0 }
  0x16   : > { %2259 = sst [smem:[#allocation15_spill]] %s2288_s12  ;;  %p1925_p9 = por %p56_p6, %p55_p4 }
  0x17   : > { %p1929_p10 = por %p235_p7, %p49_p1  ;;  %s39_s17 = ssub.s32 %s1808_s30, %s2288_s12 }
  0x18   : > { %p1935_p11 = por %p241_p8, %p55_p4  ;;  %p40_p12 = scmp.eq.s32.totalorder %s39_s17, 0 }
  0x19   : > { %s2261_s16 = scalar_select %p1929_p10, 1, 0 }
  0x1a   : > { %s2262_s18 = scalar_select %p1935_p11, 1, 0 }
  0x1b   : > { %p1576_p13 = scmp.lt.s32.totalorder %s1812_s8, 4  ;;  %s261_s19 = sand.u32 1, %s1792_s26  }
  0x1c   : > { %2263 = sst [smem:[#allocation16_spill]] %s2262_s18  ;;  %s1405_s21 = sshll.u32 %s261_s19, 3 }
  0x1d   : > { %s1942_s20 = scalar_select %p40_p12, %s1792_s26, %s42_s13  }
  0x1e   : > { %s1406_s22 = sshll.u32 %s1808_s30, 7  ;;  %s2265_s0 = sld [smem:[#allocation18_spill]] }
  0x1f   : > { %2264 = sst [smem:[#allocation17_spill]] %s1942_s20  ;;  %s265_s12 = scalar_lea.vmem [#allocation2], %s1405_s21 }
  0x20   : > { %s272_s11 = sshll.u32 %s265_s12, 4  ;;  %p1954_p0 = pnand %p1576_p13, %p1917_p3  ;;  %s1950_s11 = int_to_ptr.vmem [resolvable:$true] %s272_s11 }
  0x21   : > { %s262_s13 = scalar_lea.sflag [#allocation3], %s261_s19 }
  0x22   : > { %p1686_p5 = pneg %p1954_p0 }
  0x24   : > { %s1948_s10 = scalar_lea.hbm %s2265_s0, %s1406_s22  ;;  %s1689_s14 = scalar_lea.hbm %s2265_s0, 256 }
  0x25   : > { %s1684_s22 = scalar_lea.hbm %s1948_s10, 128  ;;  %p1690_p3 = scmp.lt.u32.totalorder %s1948_s10, %s2265_s0 }
  0x26   : > { %p1685_p4 = scmp.ne.s32.totalorder %s1948_s10, %s1684_s22  ;;  %p1691_p8 = scmp.lt.u32.totalorder %s1689_s14, %s1684_s22 }
  0x27   : > { %p1693_p13 = scmp.lt.u32.totalorder %s1684_s22, %s1948_s10 }
  0x28   : > { %p1687_p6 = pnand %p1686_p5, %p1685_p4  ;;  %p1692_p12 = por %p1691_p8, %p1690_p3 }
  0x2a   : > { %p1688_p7 = pneg %p1687_p6  ;;  %p1694_p1 = por %p1693_p13, %p1692_p12 }
  0x2c   : > { %p1695_p2 = pnand %p1694_p1, %p1688_p7 }
  0x2e   : > { %1698 = shalt.err (!%p1695_p2)
}
  0x2f   : > { %s1699_s19 = scalar_lea.vmem %s1950_s11, 128  ;;  %s1814_s12 = smov [#allocation2]  }
  0x30   : > { %p1700_p4 = scmp.ne.s32.totalorder %s1950_s11, %s1699_s19  ;;  %s1704_s21 = sshll.u32 %s1814_s12, 4  ;;  %s1705_s21 = int_to_ptr.vmem [resolvable:$false] %s1704_s21 }
  0x31   : > { %s1706_s23 = scalar_lea.vmem %s1705_s21, 256  ;;  %p1707_p10 = scmp.lt.s32.totalorder %s1950_s11, %s1705_s21 }
  0x32   : > { %p1702_p6 = pnand %p1700_p4, %p1686_p5  ;;  %p1708_p3 = scmp.lt.s32.totalorder %s1706_s23, %s1699_s19 }
  0x34   : > { %p1703_p11 = pneg %p1702_p6  ;;  %p1709_p8 = por %p1708_p3, %p1707_p10 }
  0x36   : > { %p1710_p12 = pnand %p1709_p8, %p1703_p11 }
  0x38   : > { %1713 = shalt.err (!%p1710_p12)
}
  0x39   : > { %1571 = dma.hbm_to_vmem [thread:$0]  (!%p1954_p0), %s1948_s10, 128, %s1950_s11, %s262_s13  }
  0x3a   : > { %p2267_p1 = scmp.lt.s32.totalorder %s1812_s8, 5  ;;  %p2268_p2 = scmp.ge.s32.totalorder %s1812_s8, 1 }
  0x3c   : > { %p323_p5 = pnand %p2268_p2, %p2267_p1 }
  0x3d   : > { %s1990_s22 = sand.u32 (!%p323_p5), 1, %s1788_s25  }
  0x3e   : > { %326 = sbr.rel (%p323_p5) target bundleno = 2728 (0xaa8), region = 48  ;;  %s1408_s14 = sshll.u32 (!%p323_p5), %s1990_s22, 3 }
  0x3f   : > { %s329_s9 = scalar_lea.sflag (!%p323_p5), [#allocation3], %s1990_s22  ;;  %s332_s19 = scalar_lea.vmem (!%p323_p5), [#allocation2], %s1408_s14 }
  0x45   : > { %1775 = dma.done.wait (%p1925_p9), %s329_s9, 128  }
  0x46   : > { %1777 = vsyncadd (%p1925_p9), %s329_s9, 4294967168  ;;  %p390_p10 = scmp.lt.s32.totalorder %s1800_s28, 1  ;;  %p393_p11 = scmp.lt.s32.totalorder %s1796_s27, 1 }
  0x47   : > { %s2029_s30 = scalar_lea.vmem [#allocation5], %s1408_s14  ;;  %p1419_p9 = scmp.ne.s32.totalorder %s1796_s27, 0 }
  0x48   : > { %s2001_s11 = scalar_select %p390_p10, %s1800_s28, 1 }
  0x49   : > { %s394_s10 = scalar_select %p393_p11, %s1796_s27, 1 }
  0x4a   : > { %421 = sbr.rel (%p1419_p9) target bundleno = 81 (0x51), region = 56  ;;  %v422_v0 = vld [vmem:[%s332_s19] sm:$0xff] (!%p1419_p9)  ;;  %vm423_vm0 = vcmask (!%p1419_p9), 261120  }
  0x4b   : > { %s1446_s21 = sshll.u32 %s394_s10, 4  ;;  %s1449_s23 = sshll.u32 %s394_s10, 5  ;;  %424 = vst.msk [vmem:[%s2029_s30] sm:$0xff] (!%p1419_p9), %vm423_vm0, %v422_v0 }
  0x4c   : > { %s397_s15 = scalar_lea.vmem %s2232_s2, %s1446_s21  ;;  %s2014_s20 = scalar_lea.vmem %s2233_s3, %s1446_s21 }
  0x4d   : > { %s2019_s18 = scalar_lea.vmem %s2234_s4, %s1446_s21  ;;  %s2024_s17 = scalar_lea.vmem %s2235_s5, %s1449_s23 }
  0x4e   : > { %s1418_s13 = sshll.u32 %s394_s10, 3 }
  0x4f   : > { %s416_s0 = scalar_lea.vmem %s2236_s6, %s1418_s13 }
  0x51 PF: > { %v1652_v1 = vld [vmem:[%s397_s15] sm:$0xff]   ;;  %v1815_v2 = vmov 0.0   ;;  %v1653_v3 = vld [vmem:[%s397_s15 + $0x8] sm:$0xff]   ;;  %vm1816_vm1 = vmmov 0   ;;  %vm451_vm2 = vcmask 261120   ;;  %v435_v6 = vlaneseq  ;;  %s1817_s7 = smov 104   ;;  %s2269_s8 = scalar_lea.vmem %s2231_s1, %s2001_s11 }
  0x52   : > { %1480 = vmatprep.subr.bf16.mxu0 %v1815_v2  ;;  %1488 = vmatprep.subr.bf16.mxu1 %v1815_v2  ;;  %v2038_v4 = vld [vmem:[%s2029_s30] sm:$0xff]  ;;  %v2052_v9 = vld [vmem:[%s416_s0] sm:$0xff]  ;;  %s1818_s24 = smov 120   ;;  %s1819_s25 = smov 96   ;;  %vm520_vm3 = vcmask 64512   ;;  %vm764_vm4 = vcmask 1043456  }
  0x53   : > { %1481 = vmatpush3.bf16.msra.mxu0 %v1652_v1  ;;  %1484 = vmatprep.mubr.msk.bf16.mxu0 %vm1816_vm1, %v1815_v2  ;;  %v430_v5 = vpack.c.bf16 %v2038_v4, %v2038_v4  ;;  %v2049_v7 = vshrl.u32 %v435_v6, 7  ;;  %s1820_s26 = smov 112   ;;  %v427_v33 = vld [vmem:[%s2269_s8] sm:$0x1]  ;;  %s1821_s14 = smov 64   ;;  %vm965_vm5 = vcmask 130048  }
  0x54   : > { %1482 = vmatprep.subr.bf16.mxu0 %v1815_v2  ;;  %1490 = vmatprep.mubr.msk.bf16.mxu1 %vm1816_vm1, %v1815_v2  ;;  %v428_v34 = vsub.f32 1.0, %v427_v33  ;;  %s1822_s19 = smov 8   ;;  %s1823_s11 = smov 16   ;;  %vm967_vm6 = vcmask 195584   ;;  %vm1168_vm7 = vcmask 523264  }
  0x55   : > { %v437_v8 = vsub.s32 0, %v2049_v7  ;;  %s1824_s10 = smov 24   ;;  %s2270_s23 = sld [smem:[#allocation19_spill]] }
  0x56   : > { %v429_v35 = vmul.f32 -10000.0, %v428_v34  ;;  %s1238_s9 = scalar_lea.sflag [#allocation4], %s1990_s22  ;;  %p2271_p7 = scmp.ne.s32.totalorder %s2261_s16, 0 }
  0x57   : > { %1483 = vmatpush3.bf16.msra.mxu0 %v1653_v3  ;;  %v438_v10 = vrot.slane %v2052_v9, %v437_v8 }
  0x58   : > { %1494 = vmatprep.subr.bf16.mxu0 %v1815_v2  ;;  %v516_v36 = vrot.slane %v429_v35, %v437_v8 }
  0x5a   : > { %1485 = vmatmul.mubr.msk.bf16.vlgmr.msra.gmra.mrb[0].mxu0 %vm451_vm2, %v430_v5 }
  0x5b   : > { %1496 = vmatprep.mubr.msk.bf16.mxu0 %vm1816_vm1, %v1815_v2 }
 0x12d   : > { %v489_v11 = vpop.f32.mrb[0].mxu0 }
 0x12e   : > { %v490_v12 = vadd.f32 %v489_v11, %v438_v10  ;;  %v1486_v13 = vpop.f32.mrb[1].mxu0 }
 0x12f   : > { %v492_v14 = vpop.f32.mrb[2].mxu0 }
 0x130   : > { %v2055_v15 = vpack.c.bf16 %v490_v12, %v490_v12  ;;  %v1487_v16 = vpop.f32.mrb[3].mxu0  ;;  %v495_v17 = vmul.f32 0.35355338, %v490_v12 }
 0x132   : > { %510 = vrot.lane.b32.xlu1 %v2055_v15, %s1817_s7  ;;  %506 = vrot.lane.b32.xlu0 %v2055_v15, %s1818_s24  ;;  %v496_v20 = vpack.c.bf16 %v495_v17, %v495_v17 }
 0x136   : > { %518 = vrot.lane.b32.xlu1 %v2055_v15, %s1819_s25  ;;  %508 = vrot.lane.b32.xlu0 %v2055_v15, %s1820_s26 }
 0x1a4   : > { %v2061_v18 = vpop.permute.xlu1 %510  ;;  %v2063_v19 = vpop.permute.xlu0 %506 }
 0x1a5   : > { %567 = vrot.lane.b32.xlu0 %v2063_v19, %s1819_s25 }
 0x1a8   : > { %v519_v21 = vpop.permute.xlu1 %518  ;;  %v2066_v22 = vpop.permute.xlu0 %508 }
 0x1a9   : > { %615 = vrot.lane.b32.xlu1 %v2066_v22, %s1819_s25  ;;  %499 = vrot.lane.b32.xlu0 %v496_v20, %s1818_s24  ;;  %v525_v23 = vsel %vm520_vm3, %v519_v21, 0 }
 0x1aa   : > { %1489 = vmatpush3.bf16.xpose.msra.mxu1 %v525_v23 }
 0x1ab   : > { %1500 = vmatprep.subr.bf16.mxu1 %v1815_v2 }
 0x1ad   : > { %663 = vrot.lane.b32.xlu1 %v2061_v18, %s1819_s25  ;;  %501 = vrot.lane.b32.xlu0 %v496_v20, %s1820_s26 }
 0x1b1   : > { %503 = vrot.lane.b32.xlu1 %v496_v20, %s1817_s7  ;;  %1491 = vmatmul.mubr.msk.bf16.vlgmr.msra.gmra.mrb[0].mxu1 %vm520_vm3, %v496_v20 }
 0x1b2   : > { %1502 = vmatprep.mubr.msk.bf16.mxu1 %vm1816_vm1, %v1815_v2 }
 0x217   : > { %v568_v24 = vpop.permute.xlu0 %567 }
 0x218   : > { %v573_v25 = vsel %vm520_vm3, %v568_v24, 0 }
 0x219   : > { %1495 = vmatpush3.bf16.xpose.msra.mxu0 %v573_v25 }
 0x21a   : > { %1506 = vmatprep.subr.bf16.mxu0 %v1815_v2 }
 0x21b   : > { %v616_v26 = vpop.permute.xlu1 %615  ;;  %v500_v28 = vpop.permute.xlu0 %499 }
 0x21c   : > { %v621_v27 = vsel %vm520_vm3, %v616_v26, 0 }
 0x21d   : > { %1501 = vmatpush3.bf16.xpose.msra.mxu1 %v621_v27 }
 0x21e   : > { %1512 = vmatprep.subr.bf16.mxu1 %v1815_v2 }
 0x21f   : > { %v664_v29 = vpop.permute.xlu1 %663  ;;  %v502_v31 = vpop.permute.xlu0 %501 }
 0x220   : > { %v669_v30 = vsel %vm520_vm3, %v664_v29, 0  ;;  %1497 = vmatmul.mubr.msk.bf16.vlgmr.msra.gmra.mrb[4].mxu0 %vm520_vm3, %v500_v28 }
 0x221   : > { %1507 = vmatpush3.bf16.xpose.msra.mxu0 %v669_v30  ;;  %1508 = vmatprep.mubr.msk.bf16.mxu0 %vm1816_vm1, %v1815_v2 }
 0x222   : > { %1518 = vmatprep.subr.bf16.mxu0 %v1815_v2 }
 0x223   : > { %v504_v32 = vpop.permute.xlu1 %503 }
 0x224   : > { %1503 = vmatmul.mubr.msk.bf16.vlgmr.msra.gmra.mrb[4].mxu1 %vm520_vm3, %v502_v31 }
 0x225   : > { %1514 = vmatprep.mubr.msk.bf16.mxu1 %vm1816_vm1, %v1815_v2 }
 0x228   : > { %1509 = vmatmul.mubr.msk.bf16.vlgmr.msra.gmra.mrb[8].mxu0 %vm520_vm3, %v504_v32 }
 0x229   : > { %1520 = vmatprep.mubr.msk.bf16.mxu0 %vm1816_vm1, %v1815_v2 }
 0x284   : > { %v561_v37 = vpop.f32.mrb[0].mxu1 }
 0x285   : > { %v562_v38 = vadd.f32 %v561_v37, %v516_v36  ;;  %v1492_v39 = vpop.f32.mrb[1].mxu1 }
 0x286   : > { %v564_v40 = vpop.f32.mrb[2].mxu1 }
 0x287   : > { %v1493_v41 = vpop.f32.mrb[3].mxu1  ;;  %v711_v42 = vsel %vm520_vm3, %v562_v38, -inf }
 0x288   : > { %712 = vmax.xlane.f32.xlu0 %v711_v42 }
 0x2f3   : > { %v609_v43 = vpop.f32.mrb[4].mxu0 }
 0x2f4   : > { %v610_v44 = vadd.f32 %v609_v43, %v516_v36  ;;  %v1498_v45 = vpop.f32.mrb[5].mxu0 }
 0x2f5   : > { %v612_v46 = vpop.f32.mrb[6].mxu0 }
 0x2f6   : > { %v1499_v47 = vpop.f32.mrb[7].mxu0  ;;  %v714_v48 = vsel %vm520_vm3, %v610_v44, -inf }
 0x2f7   : > { %v657_v49 = vpop.f32.mrb[4].mxu1  ;;  %715 = vmax.xlane.f32.xlu1 %v714_v48 }
 0x2f8   : > { %v658_v50 = vadd.f32 %v657_v49, %v516_v36  ;;  %v1504_v51 = vpop.f32.mrb[5].mxu1  ;;  %v1654_v49 = vld [vmem:[%s2014_s20] sm:$0xff]  }
 0x2f9   : > { %v660_v52 = vpop.f32.mrb[6].mxu1 }
 0x2fa   : > { %v1505_v53 = vpop.f32.mrb[7].mxu1  ;;  %v717_v54 = vsel %vm520_vm3, %v658_v50, -inf }
 0x2fb   : > { %718 = vmax.xlane.f32.xlu0 %v717_v54  ;;  %v705_v55 = vpop.f32.mrb[8].mxu0 }
 0x2fc   : > { %v706_v56 = vadd.f32 %v705_v55, %v516_v36  ;;  %v1510_v57 = vpop.f32.mrb[9].mxu0 }
 0x2fd   : > { %v708_v58 = vpop.f32.mrb[10].mxu0 }
 0x2fe   : > { %v1511_v59 = vpop.f32.mrb[11].mxu0  ;;  %v720_v60 = vsel %vm520_vm3, %v706_v56, -inf }
 0x2ff   : > { %721 = vmax.xlane.f32.xlu0 %v720_v60 }
 0x308   : > { %759 = vrot.lane.b32.xlu1 %v2055_v15, %s1821_s14 }
 0x315   : > { %v713_v61 = vpop.xlane.xlu0 %712 }
 0x316   : > { %v723_v62 = vsub.f32 %v562_v38, %v713_v61 }
 0x318   : > { %v727_v63 = vmul.f32 1.442695, %v723_v62 }
 0x31a   : > { %1662 = vpow2.f32 %v727_v63 }
 0x324   : > { %v1663_v0 = vpop.eup %1662 }
 0x325   : > { %v735_v1 = vsel %vm520_vm3, %v1663_v0, 0.0 }
 0x32c   : > { %736 = vadd.xlane.f32.xlu1 %v735_v1 }
 0x384   : > { %v716_v3 = vpop.xlane.xlu1 %715 }
 0x385   : > { %v724_v5 = vsub.f32 %v610_v44, %v716_v3 }
 0x387   : > { %v729_v6 = vmul.f32 1.442695, %v724_v5 }
 0x388   : > { %v719_v8 = vpop.xlane.xlu0 %718  ;;  %v760_v10 = vpop.permute.xlu1 %759 }
 0x389   : > { %1664 = vpow2.f32 %v729_v6  ;;  %v725_v11 = vsub.f32 %v658_v50, %v719_v8  ;;  %v766_v12 = vsel %vm764_vm4, %v760_v10, 0  ;;  %v1655_v50 = vld [vmem:[%s2014_s20 + $0x8] sm:$0xff]   ;;  %v976_v10 = vsub.s32 1, %v2049_v7  ;;  %s1251_s20 = sshll.u32 %s2029_s30, 4  ;;  %s2176_s20 = int_to_ptr.vmem [resolvable:$true] %s1251_s20 }
 0x38a   : > { %1513 = vmatpush3.bf16.msra.mxu1 %v766_v12 }
 0x38b   : > { %v731_v13 = vmul.f32 1.442695, %v725_v11  ;;  %1524 = vmatprep.subr.bf16.mxu1 %v1815_v2  ;;  %v977_v11 = vrot.slane %v2052_v9, %v976_v10 }
 0x38c   : > { %v722_v14 = vpop.xlane.xlu0 %721 }
 0x38d   : > { %1666 = vpow2.f32 %v731_v13  ;;  %v726_v15 = vsub.f32 %v706_v56, %v722_v14 }
 0x38f   : > { %v733_v16 = vmul.f32 1.442695, %v726_v15 }
 0x391   : > { %1668 = vpow2.f32 %v733_v16 }
 0x393   : > { %v1665_v17 = vpop.eup %1664 }
 0x394   : > { %v738_v20 = vsel %vm520_vm3, %v1665_v17, 0.0 }
 0x395   : > { %739 = vadd.xlane.f32.xlu0 %v738_v20 }
 0x397   : > { %v1667_v21 = vpop.eup %1666 }
 0x398   : > { %v741_v23 = vsel %vm520_vm3, %v1667_v21, 0.0 }
 0x399   : > { %742 = vadd.xlane.f32.xlu1 %v741_v23 }
 0x39b   : > { %v1669_v24 = vpop.eup %1668 }
 0x39c   : > { %v744_v25 = vsel %vm520_vm3, %v1669_v24, 0.0 }
 0x39d   : > { %745 = vadd.xlane.f32.xlu0 %v744_v25 }
 0x3aa   : > { %856 = vrot.lane.b32.xlu1 %v2066_v22, %s1821_s14 }
 0x3ae   : > { %904 = vrot.lane.b32.xlu1 %v2061_v18, %s1821_s14 }
 0x3b3   : > { %808 = vrot.lane.b32.xlu0 %v2063_v19, %s1821_s14 }
 0x3b9   : > { %v737_v26 = vpop.xlane.xlu1 %736 }
 0x3ba   : > { %1670 = vrcp.f32 %v737_v26 }
 0x3c4   : > { %v1671_v27 = vpop.eup %1670 }
 0x3c5   : > { %v751_v28 = vmul.f32 %v1671_v27, %v1663_v0  ;;  %v1656_v27 = vld [vmem:[%s2019_s18] sm:$0xff]  }
 0x3c7   : > { %v755_v29 = vpack.c.bf16 %v751_v28, %v751_v28  ;;  %v1657_v28 = vld [vmem:[%s2019_s18 + $0x8] sm:$0xff]   ;;  %s1443_s18 = sshll.u32 %s1800_s28, 7  ;;  %s1825_s28 = smov [#allocation5]  }
 0x3c8   : > { %s2174_s15 = scalar_lea.hbm %s2270_s23, %s1443_s18  ;;  %s1718_s13 = sshll.u32 %s1825_s28, 4  ;;  %s1719_s13 = int_to_ptr.vmem [resolvable:$false] %s1718_s13 }
 0x3c9   : > { %1515 = vmatmul.mubr.msk.bf16.vlgmr.msra.gmra.mrb[8].mxu1 %vm520_vm3, %v755_v29  ;;  %s1720_s0 = scalar_lea.vmem %s1719_s13, 256  ;;  %p1721_p6 = scmp.lt.s32.totalorder %s2176_s20, %s1719_s13 }
 0x3ca   : > { %1526 = vmatprep.mubr.msk.bf16.mxu1 %vm1816_vm1, %v1815_v2 }
 0x422   : > { %v740_v30 = vpop.xlane.xlu0 %739 }
 0x423   : > { %1672 = vrcp.f32 %v740_v30 }
 0x426   : > { %v743_v31 = vpop.xlane.xlu1 %742 }
 0x427   : > { %1674 = vrcp.f32 %v743_v31  ;;  %v1050_v31 = vsub.s32 2, %v2049_v7 }
 0x42a   : > { %v857_v22 = vpop.permute.xlu1 %856  ;;  %v746_v32 = vpop.xlane.xlu0 %745 }
 0x42b   : > { %v862_v18 = vsel %vm764_vm4, %v857_v22, 0  ;;  %1676 = vrcp.f32 %v746_v32  ;;  %v1055_v22 = vsub.s32 3, %v2049_v7  ;;  %v1051_v32 = vrot.slane %v2052_v9, %v1050_v31 }
 0x42c   : > { %1525 = vmatpush3.bf16.msra.mxu1 %v862_v18 }
 0x42d   : > { %v1673_v19 = vpop.eup %1672  ;;  %1536 = vmatprep.subr.bf16.mxu1 %v1815_v2 }
 0x42e   : > { %v752_v33 = vmul.f32 %v1673_v19, %v1665_v17  ;;  %v809_v34 = vpop.permute.xlu0 %808  ;;  %v905_v36 = vpop.permute.xlu1 %904 }
 0x42f   : > { %v814_v35 = vsel %vm764_vm4, %v809_v34, 0  ;;  %v910_v40 = vsel %vm764_vm4, %v905_v36, 0 }
 0x430   : > { %1519 = vmatpush3.bf16.msra.mxu0 %v814_v35  ;;  %v756_v37 = vpack.c.bf16 %v752_v33, %v752_v33  ;;  %v1056_v33 = vrot.slane %v2052_v9, %v1055_v22 }
 0x431   : > { %v1675_v38 = vpop.eup %1674  ;;  %1530 = vmatprep.subr.bf16.mxu0 %v1815_v2 }
 0x432   : > { %v753_v39 = vmul.f32 %v1675_v38, %v1667_v21  ;;  %v1659_v38 = vld [vmem:[%s2024_s17 + $0x8] sm:$0xff]  }
 0x433   : > { %1521 = vmatmul.mubr.msk.bf16.vlgmr.msra.gmra.mrb[12].mxu0 %vm520_vm3, %v756_v37  ;;  %v1658_v37 = vld [vmem:[%s2024_s17] sm:$0xff]  }
 0x434   : > { %1531 = vmatpush3.bf16.msra.mxu0 %v910_v40  ;;  %v757_v41 = vpack.c.bf16 %v753_v39, %v753_v39  ;;  %1532 = vmatprep.mubr.msk.bf16.mxu0 %vm1816_vm1, %v1815_v2  ;;  %v1660_v39 = vld [vmem:[%s2024_s17 + $0x10] sm:$0xff]   ;;  %v1661_v40 = vld [vmem:[%s2024_s17 + $0x18] sm:$0xff]   ;;  %s1714_s17 = scalar_lea.vmem %s2176_s20, 128 }
 0x435   : > { %v1677_v42 = vpop.eup %1676  ;;  %1544 = vmatprep.subr.bf16.mxu0 %v1815_v2  ;;  %p1715_p0 = scmp.ne.s32.totalorder %s2176_s20, %s1714_s17  ;;  %p1722_p3 = scmp.lt.s32.totalorder %s1720_s0, %s1714_s17 }
 0x436   : > { %v754_v43 = vmul.f32 %v1677_v42, %v1669_v24  ;;  %1527 = vmatmul.mubr.msk.bf16.vlgmr.msra.gmra.mrb[12].mxu1 %vm520_vm3, %v757_v41  ;;  %v1065_v41 = vsub.s32 4, %v2049_v7 }
 0x437   : > { %1540 = vmatprep.mubr.msk.bf16.mxu1 %vm1816_vm1, %v1815_v2  ;;  %1537 = vmatpush3.bf16.msra.mxu1 %v1654_v49  ;;  %p1716_p13 = pnand %p1715_p0, %p2271_p7  ;;  %p1723_p8 = por %p1722_p3, %p1721_p6 }
 0x438   : > { %v758_v44 = vpack.c.bf16 %v754_v43, %v754_v43  ;;  %1538 = vmatprep.subr.bf16.mxu1 %v1815_v2  ;;  %v1066_v42 = vrot.slane %v2052_v9, %v1065_v41 }
 0x439   : > { %p1717_p4 = pneg %p1716_p13 }
 0x43b   : > { %1533 = vmatmul.mubr.msk.bf16.vlgmr.msra.gmra.mrb[16].mxu0 %vm520_vm3, %v758_v44  ;;  %1539 = vmatpush3.bf16.msra.mxu1 %v1655_v50  ;;  %p1724_p12 = pnand %p1723_p8, %p1717_p4 }
 0x43c   : > { %1548 = vmatprep.mubr.msk.bf16.mxu0 %vm1816_vm1, %v1815_v2  ;;  %1552 = vmatprep.subr.bf16.mxu1 %v1815_v2 }
 0x43d   : > { %1545 = vmatpush3.bf16.msra.mxu0 %v1656_v27 }
 0x43e   : > { %1546 = vmatprep.subr.bf16.mxu0 %v1815_v2 }
 0x441   : > { %1547 = vmatpush3.bf16.msra.mxu0 %v1657_v28 }
 0x49c   : > { %v802_v45 = vpop.f32.mrb[8].mxu1 }
 0x49d   : > { %v1516_v46 = vpop.f32.mrb[9].mxu1 }
 0x49e   : > { %v805_v47 = vpop.f32.mrb[10].mxu1 }
 0x49f   : > { %v1517_v48 = vpop.f32.mrb[11].mxu1 }
 0x506   : > { %v850_v51 = vpop.f32.mrb[12].mxu0 }
 0x507   : > { %953 = vrot.lane.b32.xlu0 %v850_v51, %s1822_s19  ;;  %v1522_v52 = vpop.f32.mrb[13].mxu0 }
 0x508   : > { %v853_v53 = vpop.f32.mrb[14].mxu0 }
 0x509   : > { %v1523_v54 = vpop.f32.mrb[15].mxu0  ;;  %v898_v55 = vpop.f32.mrb[12].mxu1 }
 0x50a   : > { %957 = vrot.lane.b32.xlu1 %v898_v55, %s1823_s11  ;;  %v1528_v56 = vpop.f32.mrb[13].mxu1 }
 0x50b   : > { %v901_v57 = vpop.f32.mrb[14].mxu1 }
 0x50c   : > { %v1529_v58 = vpop.f32.mrb[15].mxu1  ;;  %v1142_v57 = vsub.s32 5, %v2049_v7 }
 0x50e   : > { %v946_v59 = vpop.f32.mrb[16].mxu0  ;;  %v1143_v58 = vrot.slane %v2052_v9, %v1142_v57 }
 0x50f   : > { %961 = vrot.lane.b32.xlu0 %v946_v59, %s1824_s10  ;;  %v1534_v60 = vpop.f32.mrb[17].mxu0 }
 0x510   : > { %v949_v61 = vpop.f32.mrb[18].mxu0 }
 0x511   : > { %v1535_v62 = vpop.f32.mrb[19].mxu0 }
 0x579   : > { %v954_v63 = vpop.permute.xlu0 %953 }
 0x57a   : > { %v964_v1 = vsel %vm520_vm3, %v802_v45, %v954_v63 }
 0x57c   : > { %v958_v0 = vpop.permute.xlu1 %957 }
 0x57d   : > { %v966_v3 = vsel %vm965_vm5, %v964_v1, %v958_v0 }
 0x581   : > { %v962_v5 = vpop.permute.xlu0 %961 }
 0x582   : > { %v968_v6 = vsel %vm967_vm6, %v966_v3, %v962_v5 }
 0x583   : > { %v969_v8 = vpack.c.bf16 %v968_v6, %v968_v6 }
 0x585   : > { %1541 = vmatmul.mubr.msk.bf16.vlgmr.msra.gmra.mrb[16].mxu1 %vm451_vm2, %v969_v8 }
 0x586   : > { %1560 = vmatprep.mubr.msk.bf16.mxu1 %vm1816_vm1, %v1815_v2  ;;  %1553 = vmatpush3.bf16.msra.mxu1 %v1658_v37 }
 0x587   : > { %1554 = vmatprep.subr.bf16.mxu1 %v1815_v2 }
 0x58a   : > { %1555 = vmatpush3.bf16.msra.mxu1 %v1659_v38 }
 0x58b   : > { %1556 = vmatprep.subr.bf16.mxu1 %v1815_v2 }
 0x58e   : > { %1557 = vmatpush3.bf16.msra.mxu1 %v1660_v39 }
 0x58f   : > { %1558 = vmatprep.subr.bf16.mxu1 %v1815_v2 }
 0x592   : > { %1559 = vmatpush3.bf16.msra.mxu1 %v1661_v40 }
 0x658   : > { %v1027_v12 = vpop.f32.mrb[16].mxu1 }
 0x659   : > { %v1028_v13 = vadd.f32 %v1027_v12, %v977_v11  ;;  %v1542_v14 = vpop.f32.mrb[17].mxu1 }
 0x65a   : > { %v1030_v15 = vpop.f32.mrb[18].mxu1  ;;  %v1228_v14 = vsub.s32 6, %v2049_v7 }
 0x65b   : > { %v1543_v16 = vpop.f32.mrb[19].mxu1  ;;  %v1033_v17 = vadd.f32 %v1028_v13, %v2038_v4  ;;  %v1233_v15 = vsub.s32 7, %v2049_v7 }
 0x65c   : > { %v1229_v16 = vrot.slane %v2052_v9, %v1228_v14 }
 0x65d   : > { %v1034_v20 = vsel %vm451_vm2, %v1033_v17, 0.0 }
 0x65e   : > { %1035 = vadd.xlane.f32.xlu1 %v1034_v20 }
 0x6eb   : > { %v1036_v21 = vpop.xlane.xlu1 %1035 }
 0x6ec   : > { %v1038_v23 = vmul.f32 0.03125, %v1036_v21  ;;  %v1234_v21 = vrot.slane %v2052_v9, %v1233_v15 }
 0x6ee   : > { %v1039_v24 = vsub.f32 %v1033_v17, %v1038_v23 }
 0x6f0   : > { %v1040_v25 = vmul.f32 %v1039_v24, %v1039_v24 }
 0x6f2   : > { %v1041_v26 = vsel %vm451_vm2, %v1040_v25, 0.0 }
 0x6f3   : > { %1042 = vadd.xlane.f32.xlu0 %v1041_v26 }
 0x780   : > { %v1043_v29 = vpop.xlane.xlu0 %1042 }
 0x781   : > { %v1044_v4 = vmul.f32 0.03125, %v1043_v29 }
 0x783   : > { %v1045_v30 = vadd.f32 1e-12, %v1044_v4 }
 0x785   : > { %1678 = vrsqrt.f32 %v1045_v30 }
 0x78f   : > { %v1679_v18 = vpop.eup %1678 }
 0x790   : > { %v1047_v19 = vmul.f32 %v1679_v18, %v1039_v24 }
 0x792   : > { %v1052_v34 = vmul.f32 %v1051_v32, %v1047_v19 }
 0x794   : > { %v1057_v35 = vadd.f32 %v1056_v33, %v1052_v34 }
 0x796   : > { %v1058_v36 = vpack.c.bf16 %v1057_v35, %v1057_v35 }
 0x798   : > { %1549 = vmatmul.mubr.msk.bf16.vlgmr.msra.gmra.mrb[20].mxu0 %vm451_vm2, %v1058_v36 }
 0x86b   : > { %v1116_v43 = vpop.f32.mrb[20].mxu0 }
 0x86c   : > { %v1117_v44 = vadd.f32 %v1116_v43, %v1066_v42  ;;  %v1550_v45 = vpop.f32.mrb[21].mxu0 }
 0x86d   : > { %v1119_v46 = vpop.f32.mrb[22].mxu0 }
 0x86e   : > { %v1123_v47 = vmul.f32 0.044715, %v1117_v44  ;;  %v1551_v48 = vpop.f32.mrb[23].mxu0  ;;  %v1122_v54 = vmul.f32 0.5, %v1117_v44 }
 0x870   : > { %v1124_v49 = vmul.f32 %v1123_v47, %v1117_v44 }
 0x872   : > { %v1125_v50 = vmul.f32 %v1124_v49, %v1117_v44 }
 0x874   : > { %v1126_v51 = vadd.f32 %v1125_v50, %v1117_v44 }
 0x876   : > { %v1127_v52 = vmul.f32 0.7978846, %v1126_v51 }
 0x878   : > { %1680 = vtanh.f32 %v1127_v52 }
 0x882   : > { %v1681_v53 = vpop.eup %1680 }
 0x883   : > { %v1129_v55 = vadd.f32 1.0, %v1681_v53 }
 0x885   : > { %v1130_v2 = vmul.f32 %v1129_v55, %v1122_v54 }
 0x887   : > { %v1131_v56 = vpack.c.bf16 %v1130_v2, %v1130_v2 }
 0x889   : > { %1561 = vmatmul.mubr.msk.bf16.vlgmr.msra.gmra.mrb[20].mxu1 %vm1168_vm7, %v1131_v56 }
 0x95c   : > { %v1206_v59 = vpop.f32.mrb[20].mxu1 }
 0x95d   : > { %v1207_v60 = vadd.f32 %v1206_v59, %v1143_v58  ;;  %v1562_v61 = vpop.f32.mrb[21].mxu1 }
 0x95e   : > { %v1209_v62 = vpop.f32.mrb[22].mxu1 }
 0x95f   : > { %v1563_v63 = vpop.f32.mrb[23].mxu1  ;;  %v1212_v0 = vadd.f32 %v1207_v60, %v1057_v35 }
 0x961   : > { %v1213_v1 = vsel %vm451_vm2, %v1212_v0, 0.0 }
 0x962   : > { %1214 = vadd.xlane.f32.xlu0 %v1213_v1 }
 0x9ef   : > { %v1215_v3 = vpop.xlane.xlu0 %1214 }
 0x9f0   : > { %v1216_v5 = vmul.f32 0.03125, %v1215_v3 }
 0x9f2   : > { %v1217_v6 = vsub.f32 %v1212_v0, %v1216_v5 }
 0x9f4   : > { %v1218_v8 = vmul.f32 %v1217_v6, %v1217_v6 }
 0x9f6   : > { %v1219_v10 = vsel %vm451_vm2, %v1218_v8, 0.0 }
 0x9f7   : > { %1220 = vadd.xlane.f32.xlu1 %v1219_v10 }
 0xa84   : > { %v1221_v11 = vpop.xlane.xlu1 %1220 }
 0xa85   : > { %v1222_v12 = vmul.f32 0.03125, %v1221_v11 }
 0xa87   : > { %v1223_v13 = vadd.f32 1e-12, %v1222_v12 }
 0xa89   : > { %1682 = vrsqrt.f32 %v1223_v13 }
 0xa93   : > { %v1683_v17 = vpop.eup %1682 }
 0xa94   : > { %v1225_v20 = vmul.f32 %v1683_v17, %v1217_v6 }
 0xa96   : > { %v1230_v23 = vmul.f32 %v1229_v16, %v1225_v20 }
 0xa98   : > { %v1235_v24 = vadd.f32 %v1234_v21, %v1230_v23 }
 0xa9a   : > { %1236 = vst.msk [vmem:[%s2029_s30] sm:$0xff] %vm451_vm2, %v1235_v24 }
 0xa9b   : > { %1727 = shalt.err (!%p1724_p12)
}
 0xa9c   : > { %s1728_s22 = scalar_lea.hbm %s2174_s15, 128  ;;  %s1732_s24 = scalar_lea.hbm %s2270_s23, 256 }
 0xa9d   : > { %p1729_p1 = scmp.ne.s32.totalorder %s2174_s15, %s1728_s22  ;;  %p1733_p10 = scmp.lt.u32.totalorder %s2174_s15, %s2270_s23 }
 0xa9e   : > { %p1734_p11 = scmp.lt.u32.totalorder %s1732_s24, %s1728_s22  ;;  %p1736_p0 = scmp.lt.u32.totalorder %s1728_s22, %s2174_s15 }
 0xa9f   : > { %p1730_p2 = pnand %p1729_p1, %p2271_p7 }
 0xaa0   : > { %p1735_p9 = por %p1734_p11, %p1733_p10 }
 0xaa1   : > { %p1731_p5 = pneg %p1730_p2 }
 0xaa2   : > { %p1737_p13 = por %p1736_p0, %p1735_p9 }
 0xaa4   : > { %p1738_p4 = pnand %p1737_p13, %p1731_p5 }
 0xaa6   : > { %1741 = shalt.err (!%p1738_p4)
}
 0xaa7   : > { %1566 = dma.vmem_to_hbm [thread:$0]  (%p2271_p7), %s2176_s20, 128, %s2174_s15, %s1238_s9  }
 0xaa8 PF: > { %s2272_s27 = sld [smem:[#allocation13_spill]]  ;;  %s2273_s29 = sld [smem:[#allocation8_spill]] }
 0xaa9   : > { %s2274_s8 = sld [smem:[#allocation16_spill]] }
 0xaae   : > { %p1577_p6 = scmp.ge.s32.totalorder %s2272_s27, 2  ;;  %s1263_s14 = sand.u32 1, %s2273_s29  }
 0xaaf   : > { %p2275_p3 = scmp.ne.s32.totalorder %s2274_s8, 0  ;;  %s1264_s19 = scalar_lea.sflag [#allocation4], %s1263_s14 }
 0xab1   : > { %p1573_p8 = pnand %p1577_p6, %p2275_p3 }
 0xab3   : > { %1779 = dma.done.wait (!%p1573_p8), %s1264_s19, 128  }
 0xab4   : > { %1781 = vsyncadd (!%p1573_p8), %s1264_s19, 4294967168  ;;  %s23_s8 = sadd.s32 1, %s2272_s27   ;;  %s2276_s24 = sld [smem:[#allocation9_spill]] }
 0xab5   : > { %p20_p12 = scmp.ge.s32.totalorder %s23_s8, 6   ;;  %s2277_s25 = sld [smem:[#allocation10_spill]] }
 0xab6   : > { %s2278_s26 = sld [smem:[#allocation17_spill]]  ;;  %s2279_s27 = sld [smem:[#allocation11_spill]] }
 0xab7   : > { %s2280_s28 = sld [smem:[#allocation12_spill]]  ;;  %s2281_s29 = sld [smem:[#allocation14_spill]] }
 0xab8   : > { %s2282_s30 = sld [smem:[#allocation15_spill]]  ;;  %22 = sbr.rel (!%p20_p12) target bundleno = 10 (0xa), region = 115 }
 0xabf   :  { %1269 = vsyncpa [#allocation3], 1 }
 0xac0   :  { %1271 = vsyncpa [#allocation3 + $0x1], 1 }
 0xac1   :  { %1272 = vsyncpa [#allocation4], 1 }
 0xac2   :  { %1274 = vsyncpa [#allocation4 + $0x1], 1 }

</bundles_post_ra>
